<compile_context>
chip_gen: v7x
topology: tpu7x:2x2x1
jax: 0.10.0
libtpu: 0.0.40
codegen_flags: <defaults>
</compile_context>

<pallas_src>
import functools

import jax
import jax.numpy as jnp
from jax.experimental import pallas as pl
from jax.experimental.pallas import tpu as pltpu


def _round_up(x, m):
    return ((x + m - 1) // m) * m


# Explicit scoped-VMEM budget: above the 16/32 MiB scoped defaults, at or
# below physical per-TC VMEM on every generation (v7x has 64 MiB / TC).
_VMEM_LIMIT_BYTES = 64 * 1024 * 1024


# ----------------------------------------------------------------------------
# pipeline_mode=pl.Buffered(n) support probe (falls back to defaults cleanly)
# ----------------------------------------------------------------------------
_BUFFERED_OK = None


def _buffered_supported():
    global _BUFFERED_OK
    if _BUFFERED_OK is not None:
        return _BUFFERED_OK
    try:
        def _probe_kernel(a_ref, w_ref, o_ref):
            o_ref[...] = a_ref[...] + w_ref[...]

        x = jnp.ones((16, 128), jnp.float32)
        w = jnp.ones((8, 128), jnp.float32)
        out = pl.pallas_call(
            _probe_kernel,
            out_shape=jax.ShapeDtypeStruct((16, 128), jnp.float32),
            grid=(2,),
            in_specs=[
                pl.BlockSpec((8, 128), lambda i: (i, 0),
                             pipeline_mode=pl.Buffered(3)),   # streamed, deeper
                pl.BlockSpec((8, 128), lambda i: (0, 0),
                             pipeline_mode=pl.Buffered(1)),   # resident, single
            ],
            out_specs=pl.BlockSpec((8, 128), lambda i: (i, 0)),
        )(x, w)
        jax.block_until_ready(out)
        _BUFFERED_OK = True
    except Exception:  # pragma: no cover - fall back to default double-buffering
        _BUFFERED_OK = False
    return _BUFFERED_OK


def _spec(shape, index_map, nbuf=None):
    if nbuf is not None and _buffered_supported():
        return pl.BlockSpec(shape, index_map, pipeline_mode=pl.Buffered(nbuf))
    return pl.BlockSpec(shape, index_map)


# ----------------------------------------------------------------------------
# Fused 2-layer MLP: relu(relu(x @ W1 + b1) @ W2 + b2)
# ----------------------------------------------------------------------------
def mlp_kernel(x_ref, w1_ref, b1_ref, w2_ref, b2_ref, o_ref):
    h = jnp.dot(x_ref[...], w1_ref[...], preferred_element_type=jnp.float32)
    h = jnp.maximum(h + b1_ref[...], 0.0)
    o = jnp.dot(h.astype(w2_ref.dtype), w2_ref[...],
                preferred_element_type=jnp.float32)
    o_ref[...] = jnp.maximum(o + b2_ref[...], 0.0).astype(o_ref.dtype)


def pallas_mlp(x, w1, b1, w2, b2, *, block_rows=256, out_dtype=jnp.float32):
    """Row-tiled fused MLP; weights/biases stay VMEM-resident (single buffer)."""
    M, Din = x.shape
    H = w1.shape[1]
    Dout = w2.shape[1]

    din_p = _round_up(Din, 128)
    h_p = _round_up(H, 128)
    dout_p = _round_up(Dout, 128)

    tm = _round_up(min(block_rows, max(M, 8)), 8)
    # v7x megacore: give the "parallel" row axis at least 2 tiles when M allows.
    if _round_up(M, tm) // tm < 2 and M > 8:
        tm = _round_up(pl.cdiv(M, 2), 8)
    m_p = _round_up(M, tm)

    # Zero padding is exact: padded x cols hit zero W1 rows; padded hidden
    # units have zero W1 cols / b1 -> relu(0)=0 -> zero W2 rows; padded output
    # cols / rows are sliced off below.
    xp = jnp.pad(x, ((0, m_p - M), (0, din_p - Din))).astype(jnp.bfloat16)
    w1p = jnp.pad(w1, ((0, din_p - Din), (0, h_p - H))).astype(jnp.bfloat16)
    b1p = jnp.pad(b1, ((0, 0), (0, h_p - H)))
    w2p = jnp.pad(w2, ((0, h_p - H), (0, dout_p - Dout))).astype(jnp.bfloat16)
    b2p = jnp.pad(b2, ((0, 0), (0, dout_p - Dout)))

    out = pl.pallas_call(
        mlp_kernel,
        out_shape=jax.ShapeDtypeStruct((m_p, dout_p), out_dtype),
        grid=(m_p // tm,),
        in_specs=[
            _spec((tm, din_p), lambda i: (i, 0)),
            _spec((din_p, h_p), lambda i: (0, 0), nbuf=1),   # resident weights
            _spec((1, h_p), lambda i: (0, 0), nbuf=1),       # resident bias
            _spec((h_p, dout_p), lambda i: (0, 0), nbuf=1),  # resident weights
            _spec((1, dout_p), lambda i: (0, 0), nbuf=1),    # resident bias
        ],
        out_specs=pl.BlockSpec((tm, dout_p), lambda i: (i, 0)),
        compiler_params=pltpu.CompilerParams(
            dimension_semantics=("parallel",),
            vmem_limit_bytes=_VMEM_LIMIT_BYTES),
    )(xp, w1p, b1p, w2p, b2p)
    return out[:M, :Dout]


# ----------------------------------------------------------------------------
# Block-sparse SpMM (one LightGCN hop) with fused mean/cast epilogue
# ----------------------------------------------------------------------------
def spmm_bs_kernel(slot_ref, ids_ref, cnt_ref,          # scalar prefetch (SMEM)
                   adj_ref, emb_ref, sum_in_ref,        # inputs
                   nxt_ref, sum_out_ref,                # outputs
                   acc_ref,                             # VMEM scratch
                   *, out_scale, block_k, max_k, emb_resident):
    i = pl.program_id(0)
    k = pl.program_id(1)

    @pl.when(k == 0)
    def _():
        acc_ref[...] = jnp.zeros_like(acc_ref)

    # Only the first cnt[i] steps of this row tile carry a nonzero adj block.
    @pl.when(k < cnt_ref[i])
    def _():
        if emb_resident:
            col = ids_ref[i * max_k + k]
            start = pl.multiple_of(col * block_k, block_k)
            e = emb_ref[pl.ds(start, block_k), :]
        else:
            e = emb_ref[...]
        acc_ref[...] += jnp.dot(adj_ref[0, 0], e,
                                preferred_element_type=jnp.float32)

    @pl.when(k == pl.num_programs(1) - 1)
    def _():
        hop = acc_ref[...]
        nxt_ref[...] = hop.astype(nxt_ref.dtype)                   # next-hop input (bf16)
        sum_out_ref[...] = (sum_in_ref[...] + hop) * out_scale     # running layer sum (f32)


def build_block_sparse_adj(adj_p, block_m, block_k):
    """Pack a dense padded adjacency into block-CSR form.

    Returns (packed bf16 blocks [nrt, max_k, bm, bk], flattened clamped
    block-column ids, flattened clamped adj slots, per-row-tile counts, max_k).
    Padded (k >= cnt[i]) entries repeat the last valid index so the pipelined
    DMA for those steps is skipped; their compute is gated off with pl.when.
    """
    n_p = adj_p.shape[0]
    nrt = n_p // block_m
    nct = n_p // block_k
    blk = adj_p.reshape(nrt, block_m, nct, block_k).transpose(0, 2, 1, 3)
    nz = jnp.any(blk != 0.0, axis=(2, 3))                       # (nrt, nct)
    cnt = jnp.sum(nz, axis=1).astype(jnp.int32)                  # (nrt,)
    # Host sync for a static grid extent (forward runs eagerly).
    # TODO(synk): accept a true sparse / block-CSR adjacency directly.
    max_k = max(int(jnp.max(cnt)), 1)

    order = jnp.argsort(jnp.where(nz, 0, 1), axis=1).astype(jnp.int32)
    ids = order[:, :max_k]                                       # (nrt, max_k)
    kk = jnp.arange(max_k, dtype=jnp.int32)[None, :]
    last = jnp.take_along_axis(ids, jnp.maximum(cnt - 1, 0)[:, None], axis=1)
    emb_ids = jnp.where(kk < cnt[:, None], ids, last)            # clamped col ids
    adj_slot = jnp.minimum(kk, jnp.maximum(cnt - 1, 0)[:, None]).astype(jnp.int32)

    packed = jnp.take_along_axis(blk, emb_ids[:, :, None, None], axis=1)
    return (packed.astype(jnp.bfloat16),
            emb_ids.reshape(-1).astype(jnp.int32),
            adj_slot.reshape(-1).astype(jnp.int32),
            cnt, max_k)


def _spmm_bs(packed, emb_bf16, sum_in, adj_slot, emb_ids, cnt, *,
             block_m, block_k, out_scale, emb_resident):
    nrt = cnt.shape[0]
    max_k = adj_slot.shape[0] // nrt
    n_p, d_p = emb_bf16.shape

    if emb_resident:
        # Whole embedding table resident in VMEM (single buffer); sliced
        # dynamically in-kernel using the prefetched block-column ids.
        emb_spec = _spec((n_p, d_p), lambda i, k, s, ids, c: (0, 0), nbuf=1)
    else:
        # Stream only the nonzero block columns.
        emb_spec = _spec((block_k, d_p),
                         lambda i, k, s, ids, c: (ids[i * max_k + k], 0), nbuf=3)

    kernel = functools.partial(
        spmm_bs_kernel, out_scale=out_scale, block_k=block_k, max_k=max_k,
        emb_resident=emb_resident)

    grid_spec = pltpu.PrefetchScalarGridSpec(
        num_scalar_prefetch=3,
        grid=(nrt, max_k),
        in_specs=[
            _spec((1, 1, block_m, block_k),
                  lambda i, k, s, ids, c: (i, s[i * max_k + k], 0, 0), nbuf=3),
            emb_spec,
            _spec((block_m, d_p), lambda i, k, s, ids, c: (i, 0)),
        ],
        out_specs=[
            pl.BlockSpec((block_m, d_p), lambda i, k, s, ids, c: (i, 0)),
            pl.BlockSpec((block_m, d_p), lambda i, k, s, ids, c: (i, 0)),
        ],
        scratch_shapes=[pltpu.VMEM((block_m, d_p), jnp.float32)],
    )

    nxt, layer_sum = pl.pallas_call(
        kernel,
        grid_spec=grid_spec,
        out_shape=(jax.ShapeDtypeStruct((n_p, d_p), jnp.bfloat16),
                   jax.ShapeDtypeStruct((n_p, d_p), jnp.float32)),
        # Call args: (adj_slot, emb_ids, cnt, packed, emb_bf16, sum_in); the
        # alias index counts the scalar-prefetch operands, so sum_in is input 5
        # and is updated in place as the f32 layer-sum output (output 1).
        input_output_aliases={5: 1},
        compiler_params=pltpu.CompilerParams(
            dimension_semantics=("parallel", "arbitrary"),
            vmem_limit_bytes=_VMEM_LIMIT_BYTES),
    )(adj_slot, emb_ids, cnt, packed, emb_bf16, sum_in)
    return nxt, layer_sum


def pallas_propagate(adj, emb, num_layers, *, block_m=1024, block_k=512,
                     resident_emb_max_bytes=16 * 1024 * 1024):
    """mean over [E, A@E, ..., A^L@E] with a block-sparse Pallas SpMM per hop."""
    N, D = emb.shape
    if num_layers == 0:
        return emb

    d_p = _round_up(D, 128)
    block_m = min(_round_up(block_m, 128), _round_up(N, 128))
    block_k = min(_round_up(block_k, 128), block_m)
    block_m = (block_m // block_k) * block_k       # n_p divides by both tile dims
    n_p = _round_up(N, block_m)

    adj_p = jnp.pad(adj.astype(jnp.float32), ((0, n_p - N), (0, n_p - N)))
    packed, emb_ids, adj_slot, cnt, _ = build_block_sparse_adj(adj_p, block_m, block_k)

    sum_f32 = jnp.pad(emb.astype(jnp.float32), ((0, n_p - N), (0, d_p - D)))
    cur_bf16 = sum_f32.astype(jnp.bfloat16)
    emb_resident = (n_p * d_p * 2) <= resident_emb_max_bytes

    for hop in range(num_layers):
        last = hop == num_layers - 1
        scale = 1.0 / float(num_layers + 1) if last else 1.0
        cur_bf16, sum_f32 = _spmm_bs(
            packed, cur_bf16, sum_f32, adj_slot, emb_ids, cnt,
            block_m=block_m, block_k=block_k, out_scale=scale,
            emb_resident=emb_resident)
    return sum_f32[:N, :D]


# ----------------------------------------------------------------------------
# LightGCN2 model (forward pass)
# ----------------------------------------------------------------------------
class LightGCN2Pallas:
    def __init__(self, num_users, num_items, embedding_dim, num_layers,
                 user_input_dim, item_input_dim,
                 user_content_embedding, item_content_embedding,
                 user_pretrained_embedding, item_pretrained_embedding,
                 key, *, mlp_block_rows=256,
                 propagate_block_m=1024, propagate_block_k=512):
        self.num_users = num_users
        self.num_items = num_items
        self.embedding_dim = embedding_dim
        self.num_layers = num_layers
        self.user_content_emb = user_content_embedding
        self.item_content_emb = item_content_embedding
        self.user_pretrained_emb = user_pretrained_embedding
        self.item_pretrained_emb = item_pretrained_embedding
        self.mlp_block_rows = mlp_block_rows
        self.propagate_block_m = propagate_block_m
        self.propagate_block_k = propagate_block_k

        hidden = 512  # MLP hidden_dim is hard-coded to 512 in the PyTorch module
        ks = jax.random.split(key, 12)

        def linear_params(kw, kb, d_in, d_out):
            bound = 1.0 / jnp.sqrt(d_in)
            w = jax.random.uniform(kw, (d_in, d_out), jnp.float32, -bound, bound)
            b = jax.random.uniform(kb, (1, d_out), jnp.float32, -bound, bound)
            return w, b

        # mlp_u
        self.u_w1, self.u_b1 = linear_params(ks[0], ks[1], user_input_dim, hidden)
        self.u_w2, self.u_b2 = linear_params(ks[2], ks[3], hidden, embedding_dim)
        # mlp_i
        self.i_w1, self.i_b1 = linear_params(ks[4], ks[5], item_input_dim, hidden)
        self.i_w2, self.i_b2 = linear_params(ks[6], ks[7], hidden, embedding_dim)
        # result_dim_reduction MLP: 2E -> 2E -> E
        self.r_w1, self.r_b1 = linear_params(ks[8], ks[9], 2 * embedding_dim, 2 * embedding_dim)
        self.r_w2, self.r_b2 = linear_params(ks[10], ks[11], 2 * embedding_dim, embedding_dim)

    def forward(self, adj_norm):
        # content MLPs (Pallas, row-tiled); bf16 outputs -> bf16 consumers
        user_input_emb_2 = pallas_mlp(self.user_content_emb,
                                      self.u_w1, self.u_b1, self.u_w2, self.u_b2,
                                      block_rows=self.mlp_block_rows,
                                      out_dtype=jnp.bfloat16)
        item_input_emb_2 = pallas_mlp(self.item_content_emb,
                                      self.i_w1, self.i_b1, self.i_w2, self.i_b2,
                                      block_rows=self.mlp_block_rows,
                                      out_dtype=jnp.bfloat16)

        # concat pretrained + content embeddings (glue, plain JAX)
        cat_user = jnp.concatenate(
            [self.user_pretrained_emb, user_input_emb_2.astype(jnp.float32)], axis=1)
        cat_item = jnp.concatenate(
            [self.item_pretrained_emb, item_input_emb_2.astype(jnp.float32)], axis=1)
        all_embeddings = jnp.concatenate([cat_user, cat_item], axis=0)

        # graph propagation + mean over layers (block-sparse Pallas SpMM per hop)
        final_embeddings = pallas_propagate(adj_norm, all_embeddings,
                                            self.num_layers,
                                            block_m=self.propagate_block_m,
                                            block_k=self.propagate_block_k)

        # dimension reduction MLP (Pallas, f32 model output)
        final_embeddings = pallas_mlp(final_embeddings,
                                      self.r_w1, self.r_b1, self.r_w2, self.r_b2,
                                      block_rows=self.mlp_block_rows,
                                      out_dtype=jnp.float32)

        user_embeddings = final_embeddings[: self.num_users]
        item_embeddings = final_embeddings[self.num_users:]
        return user_embeddings, item_embeddings


# ----------------------------------------------------------------------------
# Pure-JAX references (mirror the bf16-operand / f32-accumulate math)
# ----------------------------------------------------------------------------
def reference_propagate(adj, emb, num_layers):
    bf16 = jnp.bfloat16
    adj_bf = adj.astype(bf16)
    total = emb.astype(jnp.float32)
    cur_bf = emb.astype(bf16)
    for _ in range(num_layers):
        cur = jnp.dot(adj_bf, cur_bf, preferred_element_type=jnp.float32)
        total = total + cur
        cur_bf = cur.astype(bf16)
    return total / float(num_layers + 1)


def reference_forward(m, adj_norm):
    bf16 = jnp.bfloat16

    def mlp(x, w1, b1, w2, b2, out_dtype):
        h = jnp.dot(x.astype(bf16), w1.astype(bf16),
                    preferred_element_type=jnp.float32)
        h = jnp.maximum(h + b1, 0.0)
        o = jnp.dot(h.astype(bf16), w2.astype(bf16),
                    preferred_element_type=jnp.float32)
        return jnp.maximum(o + b2, 0.0).astype(out_dtype)

    u2 = mlp(m.user_content_emb, m.u_w1, m.u_b1, m.u_w2, m.u_b2, bf16)
    i2 = mlp(m.item_content_emb, m.i_w1, m.i_b1, m.i_w2, m.i_b2, bf16)
    cat_u = jnp.concatenate([m.user_pretrained_emb, u2.astype(jnp.float32)], axis=1)
    cat_i = jnp.concatenate([m.item_pretrained_emb, i2.astype(jnp.float32)], axis=1)
    emb = jnp.concatenate([cat_u, cat_i], axis=0)

    final = reference_propagate(adj_norm, emb, m.num_layers)
    final = mlp(final, m.r_w1, m.r_b1, m.r_w2, m.r_b2, jnp.float32)
    return final[: m.num_users], final[m.num_users:]


# ----------------------------------------------------------------------------
if __name__ == "__main__":
    key = jax.random.PRNGKey(0)
    k_params, k_ucont, k_icont, k_upre, k_ipre, k_adj = jax.random.split(key, 6)

    num_users = 96
    num_items = 160
    embedding_dim = 32
    num_layers = 3
    user_input_dim = 48
    item_input_dim = 64
    N = num_users + num_items

    user_content = jax.random.normal(k_ucont, (num_users, user_input_dim), jnp.float32)
    item_content = jax.random.normal(k_icont, (num_items, item_input_dim), jnp.float32)
    user_pretrained = jax.random.normal(k_upre, (num_users, embedding_dim), jnp.float32)
    item_pretrained = jax.random.normal(k_ipre, (num_items, embedding_dim), jnp.float32)

    # Symmetric normalized bipartite adjacency (densified).  Users only touch
    # the first half of the items so the 128x128 block grid of adj_norm has an
    # all-zero block -> per-row-tile counts differ and the block-sparse skip
    # path (DMA repeat + pl.when compute gate) is actually exercised.
    R = (jax.random.uniform(k_adj, (num_users, num_items)) < 0.1).astype(jnp.float32)
    R = R * (jnp.arange(num_items)[None, :] < num_items // 2).astype(jnp.float32)
    A = jnp.zeros((N, N), jnp.float32)
    A = A.at[:num_users, num_users:].set(R)
    A = A.at[num_users:, :num_users].set(R.T)
    deg = jnp.sum(A, axis=1)
    d_inv_sqrt = jnp.where(deg > 0, 1.0 / jnp.sqrt(jnp.maximum(deg, 1e-12)), 0.0)
    adj_norm = A * d_inv_sqrt[:, None] * d_inv_sqrt[None, :]

    # Small tiles so the test exercises multi-tile grids (2 row tiles in the
    # MLPs, a 2x2 block grid with a skipped block in the propagation, resident
    # emb path).  Production defaults: mlp_block_rows=256, block_m=1024,
    # block_k=512.
    model = LightGCN2Pallas(
        num_users, num_items, embedding_dim, num_layers,
        user_input_dim, item_input_dim,
        user_content, item_content, user_pretrained, item_pretrained,
        k_params, mlp_block_rows=64,
        propagate_block_m=128, propagate_block_k=128,
    )

    user_emb, item_emb = model.forward(adj_norm)
    jax.block_until_ready((user_emb, item_emb))

    ref_u, ref_i = reference_forward(model, adj_norm)
    assert user_emb.shape == (num_users, embedding_dim)
    assert item_emb.shape == (num_items, embedding_dim)
    assert jnp.allclose(user_emb.astype(jnp.float32), ref_u, atol=2e-2, rtol=2e-2)
    assert jnp.allclose(item_emb.astype(jnp.float32), ref_i, atol=2e-2, rtol=2e-2)

    # Extra coverage: rectangular tiles + streamed (non-resident) emb path.
    emb0 = jax.random.normal(jax.random.PRNGKey(1), (N, embedding_dim), jnp.float32)
    got = pallas_propagate(adj_norm, emb0, num_layers,
                           block_m=256, block_k=128, resident_emb_max_bytes=0)
    want = reference_propagate(adj_norm, emb0, num_layers)
    jax.block_until_ready(got)
    assert jnp.allclose(got, want, atol=2e-2, rtol=2e-2)

    print("KERNEL_OK")
</pallas_src>

<mosaic_0001>
module attributes {stable_mosaic.version = 11 : i64} {
  func.func @mlp_kernel(%arg0: i32, %arg1: memref<64x128xbf16, #tpu.memory_space<vmem>>, %arg2: memref<128x512xbf16, #tpu.memory_space<vmem>>, %arg3: memref<1x512xf32, #tpu.memory_space<vmem>>, %arg4: memref<512x128xbf16, #tpu.memory_space<vmem>>, %arg5: memref<1x128xf32, #tpu.memory_space<vmem>>, %arg6: memref<64x128xbf16, #tpu.memory_space<vmem>>) attributes {dimension_semantics = [#tpu.dimension_semantics<parallel>], iteration_bounds = array<i64: 2>, scalar_prefetch = 0 : i64, scratch_operands = 0 : i64, tpu.core_type = #tpu.core_type<tc>, window_params = [{transform_indices = @transform_0, window_bounds = array<i64: 64, 128>}, {pipeline_mode = #tpu.pipeline_mode<synchronous>, transform_indices = @transform_1, window_bounds = array<i64: 128, 512>}, {pipeline_mode = #tpu.pipeline_mode<synchronous>, transform_indices = @transform_2, window_bounds = array<i64: 1, 512>}, {pipeline_mode = #tpu.pipeline_mode<synchronous>, transform_indices = @transform_3, window_bounds = array<i64: 512, 128>}, {pipeline_mode = #tpu.pipeline_mode<synchronous>, transform_indices = @transform_4, window_bounds = array<i64: 1, 128>}, {transform_indices = @transform_5, window_bounds = array<i64: 64, 128>}]} {
    %c0 = arith.constant 0 : index
    %c0_0 = arith.constant 0 : index
    %0 = vector.load %arg1[%c0, %c0_0] : memref<64x128xbf16, #tpu.memory_space<vmem>>, vector<64x128xbf16>
    %c0_1 = arith.constant 0 : index
    %c0_2 = arith.constant 0 : index
    %1 = vector.load %arg2[%c0_1, %c0_2] : memref<128x512xbf16, #tpu.memory_space<vmem>>, vector<128x512xbf16>
    %cst = arith.constant dense<0.000000e+00> : vector<64x512xf32>
    %2 = tpu.matmul %0, %1, %cst {dimension_numbers = #tpu.dot_dimension_numbers<[1], [0], [0], [1], [0, 0, 1, 1], [], []>} : vector<64x128xbf16>, vector<128x512xbf16>, vector<64x512xf32> -> vector<64x512xf32>
    %c0_3 = arith.constant 0 : index
    %c0_4 = arith.constant 0 : index
    %3 = vector.load %arg3[%c0_3, %c0_4] : memref<1x512xf32, #tpu.memory_space<vmem>>, vector<1x512xf32>
    %4 = vector.broadcast %3 : vector<1x512xf32> to vector<64x512xf32>
    %5 = arith.addf %2, %4 : vector<64x512xf32>
    %cst_5 = arith.constant 0.000000e+00 : f32
    %6 = vector.broadcast %cst_5 : f32 to vector<64x512xf32>
    %7 = arith.maximumf %5, %6 : vector<64x512xf32>
    %8 = arith.truncf %7 : vector<64x512xf32> to vector<64x512xbf16>
    %c0_6 = arith.constant 0 : index
    %c0_7 = arith.constant 0 : index
    %9 = vector.load %arg4[%c0_6, %c0_7] : memref<512x128xbf16, #tpu.memory_space<vmem>>, vector<512x128xbf16>
    %cst_8 = arith.constant dense<0.000000e+00> : vector<64x128xf32>
    %10 = tpu.matmul %8, %9, %cst_8 {dimension_numbers = #tpu.dot_dimension_numbers<[1], [0], [0], [1], [0, 0, 1, 1], [], []>} : vector<64x512xbf16>, vector<512x128xbf16>, vector<64x128xf32> -> vector<64x128xf32>
    %c0_9 = arith.constant 0 : index
    %c0_10 = arith.constant 0 : index
    %11 = vector.load %arg5[%c0_9, %c0_10] : memref<1x128xf32, #tpu.memory_space<vmem>>, vector<1x128xf32>
    %12 = vector.broadcast %11 : vector<1x128xf32> to vector<64x128xf32>
    %13 = arith.addf %10, %12 : vector<64x128xf32>
    %cst_11 = arith.constant 0.000000e+00 : f32
    %14 = vector.broadcast %cst_11 : f32 to vector<64x128xf32>
    %15 = arith.maximumf %13, %14 : vector<64x128xf32>
    %16 = arith.truncf %15 : vector<64x128xf32> to vector<64x128xbf16>
    %c0_12 = arith.constant 0 : index
    %c0_13 = arith.constant 0 : index
    %17 = vector.load %arg6[%c0_12, %c0_13] : memref<64x128xbf16, #tpu.memory_space<vmem>>, vector<64x128xbf16>
    tpu.vector_store %arg6[%c0_12, %c0_13], %16 {strides = array<i32>} : memref<64x128xbf16, #tpu.memory_space<vmem>>, vector<64x128xbf16>,
    return
  }
  func.func @transform_0(%arg0: i32) -> (i32, i32) {
    %c0_i32 = arith.constant 0 : i32
    %c0_i32_0 = arith.constant 0 : i32
    return %arg0, %c0_i32 : i32, i32
  }
  func.func @transform_1(%arg0: i32) -> (i32, i32) {
    %c0_i32 = arith.constant 0 : i32
    %c0_i32_0 = arith.constant 0 : i32
    %c0_i32_1 = arith.constant 0 : i32
    return %c0_i32, %c0_i32_0 : i32, i32
  }
  func.func @transform_2(%arg0: i32) -> (i32, i32) {
    %c0_i32 = arith.constant 0 : i32
    %c0_i32_0 = arith.constant 0 : i32
    %c0_i32_1 = arith.constant 0 : i32
    return %c0_i32, %c0_i32_0 : i32, i32
  }
  func.func @transform_3(%arg0: i32) -> (i32, i32) {
    %c0_i32 = arith.constant 0 : i32
    %c0_i32_0 = arith.constant 0 : i32
    %c0_i32_1 = arith.constant 0 : i32
    return %c0_i32, %c0_i32_0 : i32, i32
  }
  func.func @transform_4(%arg0: i32) -> (i32, i32) {
    %c0_i32 = arith.constant 0 : i32
    %c0_i32_0 = arith.constant 0 : i32
    %c0_i32_1 = arith.constant 0 : i32
    return %c0_i32, %c0_i32_0 : i32, i32
  }
  func.func @transform_5(%arg0: i32) -> (i32, i32) {
    %c0_i32 = arith.constant 0 : i32
    %c0_i32_0 = arith.constant 0 : i32
    return %arg0, %c0_i32 : i32, i32
  }
}

</mosaic_0001>

<bundles_post_ra>
// kernel: tpu_custom_call.1
= control target key start
LH: loop header
LB: loop body
LE: loop exit
PB: predicated region body
PF: predicated region fallthrough
CT: control target
= control target key end

     0   :  { %10 = vsyncpa [#allocation3], 0  ;;  %s2320_s0 = inlined_call_operand.hbm [shape: bf16[128,128], index: 0, kind: input, shape index: {}]   ;;  %s2321_s1 = inlined_call_operand.hbm [shape: bf16[128,512], index: 1, kind: input, shape index: {}]   ;;  %s2322_s2 = inlined_call_operand.hbm [shape: f32[1,512], index: 2, kind: input, shape index: {}]   ;;  %s2323_s3 = inlined_call_operand.hbm [shape: bf16[512,128], index: 3, kind: input, shape index: {}]   ;;  %s2324_s4 = inlined_call_operand.hbm [shape: f32[1,128], index: 4, kind: input, shape index: {}]   ;;  %s2325_s5 = inlined_call_operand.hbm [shape: bf16[128,128], index: 5, kind: output, shape index: {}]  }
   0x1   :  { %12 = vsyncpa [#allocation3 + $0x1], 0 }
   0x2   :  { %13 = vsyncpa [#allocation6], 0 }
   0x3   :  { %14 = vsyncpa [#allocation9], 0 }
   0x4   :  { %15 = vsyncpa [#allocation4], 0 }
   0x5   :  { %17 = vsyncpa [#allocation4 + $0x1], 0  ;;  %s1957_s18 = smov 0   ;;  %s1959_s19 = smov 0  }
   0x6   :  { %s1961_s20 = smov 0   ;;  %s1963_s21 = smov 0  }
   0x7 LB: > { %s1978_s22 = sadd.s32 4294967295, %s1912_s21   ;;  %s1306_s23 = sadd.s32 4294967294, %s1912_s21   ;;  %s1912_s21 = sphi %s1963_s21, %s2348_s21   ;;  %s1908_s20 = sphi %s1961_s20, %s2347_s20   ;;  %s1904_s19 = sphi %s1959_s19, %s2346_s19   ;;  %s1900_s18 = sphi %s1957_s18, %s2345_s18  }
   0x8   : > { %p43_p0 = scmp.ne.s32.totalorder %s1904_s19, %s1900_s18  ;;  %p2326_p1 = scmp.eq.s32.totalorder %s1978_s22, 0 }
   0x9   : > { %p157_p3 = scmp.eq.s32.totalorder %s1306_s23, 1  ;;  %p1307_p5 = scmp.ge.s32.totalorder %s1912_s21, 1 }
   0xa   : > { %p1987_p4 = por %p2326_p1, %p43_p0  ;;  %p164_p7 = scmp.lt.s32.totalorder %s1912_s21, 3 }
   0xb   : > { %p1992_p6 = por %p157_p3, %p43_p0  ;;  %s1914_s27 = smov [#allocation5]  }
   0xc   : > { %s2329_s24 = scalar_select %p1987_p4, 1, 0 }
   0xd   : > { %s2330_s25 = scalar_select %p1992_p6, 1, 0 }
   0xe   : > { %p1997_p8 = pnand %p1307_p5, %p164_p7  ;;  %s176_s28 = sshll.u32 %s1914_s27, 4  ;;  %s2001_s28 = int_to_ptr.vmem [resolvable:$true] %s176_s28 }
   0xf   : > { %s1915_s30 = smov [#allocation8]   ;;  %s1696_s9 = scalar_lea.hbm %s2321_s1, 4096 }
  0x10   : > { %s2331_s26 = scalar_select %p1997_p8, 1, 0 }
  0x11   : > { %p1538_p9 = pneg %p1997_p8  ;;  %s200_s6 = sshll.u32 %s1915_s30, 4  ;;  %s2012_s6 = int_to_ptr.vmem [resolvable:$true] %s200_s6 }
  0x12   : > { %p1697_p12 = scmp.ne.s32.totalorder %s2321_s1, %s1696_s9  ;;  %p1703_p5 = scmp.lt.u32.totalorder %s1696_s9, %s2321_s1 }
  0x13   : > { %p2008_p11 = pnand %p1538_p9, %p2326_p1 }
  0x15   : > { %p2022_p13 = pneg %p2008_p11 }
  0x17   : > { %p1699_p0 = pnand %p2022_p13, %p1697_p12 }
  0x19   : > { %p1700_p3 = pneg %p1699_p0 }
  0x1b   : > { %p1705_p7 = pnand %p1703_p5, %p1700_p3 }
  0x1d   : > { %1708 = shalt.err (!%p1705_p7)
}
  0x1e   : > { %s1709_s15 = scalar_lea.vmem %s2001_s28, 4096  ;;  %p1717_p2 = scmp.lt.s32.totalorder %s2001_s28, %s2001_s28 }
  0x1f   : > { %p1710_p9 = scmp.ne.s32.totalorder %s2001_s28, %s1709_s15  ;;  %p1718_p6 = scmp.lt.s32.totalorder %s1709_s15, %s1709_s15 }
  0x21   : > { %p1712_p10 = pnand %p1710_p9, %p2022_p13  ;;  %p1719_p12 = por %p1718_p6, %p1717_p2 }
  0x23   : > { %p1713_p1 = pneg %p1712_p10 }
  0x25   : > { %p1720_p0 = pnand %p1719_p12, %p1713_p1 }
  0x27   : > { %1723 = shalt.err (!%p1720_p0)
}
  0x28   : > { %s1916_s16 = smov 256   ;;  %s1917_s17 = smov 16  }
  0x29   : > { %1541 = dma.hbm_to_vmem [thread:$0]  (!%p2008_p11), %s2321_s1, 4096, %s2001_s28, [#allocation6], %s1916_s16, %s1916_s16, %s1917_s17  }
  0x2a   : > { %s1724_s8 = scalar_lea.hbm %s2323_s3, 4096 }
  0x2b   : > { %p1725_p2 = scmp.ne.s32.totalorder %s2323_s3, %s1724_s8  ;;  %p1731_p10 = scmp.lt.u32.totalorder %s1724_s8, %s2323_s3 }
  0x2d   : > { %p1727_p1 = pnand %p1725_p2, %p2022_p13 }
  0x2f   : > { %p1728_p6 = pneg %p1727_p1 }
  0x31   : > { %p1733_p3 = pnand %p1731_p10, %p1728_p6 }
  0x33   : > { %1736 = shalt.err (!%p1733_p3)
}
  0x34   : > { %s1737_s28 = scalar_lea.vmem %s2012_s6, 4096  ;;  %p1745_p12 = scmp.lt.s32.totalorder %s2012_s6, %s2012_s6 }
  0x35   : > { %p1738_p5 = scmp.ne.s32.totalorder %s2012_s6, %s1737_s28  ;;  %p1746_p0 = scmp.lt.s32.totalorder %s1737_s28, %s1737_s28 }
  0x37   : > { %p1740_p7 = pnand %p1738_p5, %p2022_p13  ;;  %p1747_p2 = por %p1746_p0, %p1745_p12 }
  0x39   : > { %p1741_p9 = pneg %p1740_p7 }
  0x3b   : > { %p1748_p1 = pnand %p1747_p2, %p1741_p9 }
  0x3d   : > { %1751 = shalt.err (!%p1748_p1)
}
  0x3e   : > { %s1918_s14 = smov 64   ;;  %s1919_s15 = smov 4  }
  0x3f   : > { %1547 = dma.hbm_to_vmem [thread:$0]  (!%p2008_p11), %s2323_s3, 4096, %s2012_s6, [#allocation9], %s1918_s14, %s1918_s14, %s1919_s15  }
  0x40   : > { %s1920_s23 = smov [#allocation7]   ;;  %s1921_s30 = smov [#allocation10]  }
  0x41   : > { %s190_s27 = sshll.u32 %s1920_s23, 4  ;;  %s214_s7 = sshll.u32 %s1921_s30, 4  ;;  %s191_s27 = int_to_ptr.vmem [resolvable:$true] %s190_s27  ;;  %s2069_s7 = int_to_ptr.vmem [resolvable:$true] %s214_s7 }
  0x42   : > { %s1752_s10 = scalar_lea.hbm %s2322_s2, 64 }
  0x43   : > { %p1753_p6 = scmp.ne.s32.totalorder %s2322_s2, %s1752_s10  ;;  %p1759_p5 = scmp.lt.u32.totalorder %s1752_s10, %s2322_s2 }
  0x45   : > { %p1755_p10 = pnand %p1753_p6, %p2022_p13 }
  0x47   : > { %p1756_p3 = pneg %p1755_p10 }
  0x49   : > { %p1761_p7 = pnand %p1759_p5, %p1756_p3 }
  0x4b   : > { %1764 = shalt.err (!%p1761_p7)
}
  0x4c   : > { %s1765_s16 = scalar_lea.vmem %s191_s27, 64  ;;  %p1773_p2 = scmp.lt.s32.totalorder %s191_s27, %s191_s27 }
  0x4d   : > { %p1766_p9 = scmp.ne.s32.totalorder %s191_s27, %s1765_s16  ;;  %p1774_p1 = scmp.lt.s32.totalorder %s1765_s16, %s1765_s16 }
  0x4f   : > { %p1768_p12 = pnand %p1766_p9, %p2022_p13  ;;  %p1775_p4 = por %p1774_p1, %p1773_p2 }
  0x51   : > { %p1769_p0 = pneg %p1768_p12 }
  0x53   : > { %p1776_p8 = pnand %p1775_p4, %p1769_p0 }
  0x55   : > { %1779 = shalt.err (!%p1776_p8)
}
  0x56   : > { %1544 = dma.hbm_to_vmem [thread:$0]  (!%p2008_p11), %s2322_s2, 64, %s191_s27, [#allocation6]  }
  0x57   : > { %s1780_s9 = scalar_lea.hbm %s2324_s4, 16 }
  0x58   : > { %p1781_p6 = scmp.ne.s32.totalorder %s2324_s4, %s1780_s9  ;;  %p1787_p4 = scmp.lt.u32.totalorder %s1780_s9, %s2324_s4 }
  0x5a   : > { %p1783_p10 = pnand %p1781_p6, %p2022_p13 }
  0x5c   : > { %p1784_p3 = pneg %p1783_p10 }
  0x5e   : > { %p1789_p8 = pnand %p1787_p4, %p1784_p3 }
  0x60   : > { %1792 = shalt.err (!%p1789_p8)
}
  0x61   : > { %s1793_s27 = scalar_lea.vmem %s2069_s7, 16  ;;  %s1800_s6 = scalar_lea.vmem %s2069_s7, 32 }
  0x62   : > { %p1794_p5 = scmp.ne.s32.totalorder %s2069_s7, %s1793_s27  ;;  %p1801_p12 = scmp.lt.s32.totalorder %s2069_s7, %s2069_s7 }
  0x63   : > { %p1802_p0 = scmp.lt.s32.totalorder %s1800_s6, %s1793_s27 }
  0x64   : > { %p1796_p7 = pnand %p1794_p5, %p2022_p13 }
  0x65   : > { %p1803_p2 = por %p1802_p0, %p1801_p12 }
  0x66   : > { %p1797_p9 = pneg %p1796_p7 }
  0x68   : > { %p1804_p1 = pnand %p1803_p2, %p1797_p9 }
  0x6a   : > { %1807 = shalt.err (!%p1804_p1)
}
  0x6b   : > { %1550 = dma.hbm_to_vmem [thread:$0]  (!%p2008_p11), %s2324_s4, 16, %s2069_s7, [#allocation9]  }
  0x6c   : > { %s2114_s12 = sadd.s32 1, %s1912_s21   ;;  %s30_s23 = sadd.s32 1, %s1908_s20 }
  0x6d   : > { %s27_s29 = ssub.s32 %s1912_s21, %s2114_s12  ;;  %p37_p6 = scmp.ne.s32.totalorder %s1908_s20, %s1904_s19 }
  0x6e   : > { %p28_p13 = scmp.eq.s32.totalorder %s27_s29, 0  ;;  %p38_p10 = scmp.eq.s32.totalorder %s1912_s21, 0 }
  0x6f   : > { %p2334_p4 = scmp.eq.s32.totalorder %s1978_s22, 1  ;;  %p1563_p5 = scmp.lt.s32.totalorder %s1912_s21, 2 }
  0x70   : > { %s2123_s30 = scalar_select %p28_p13, %s1908_s20, %s30_s23  }
  0x71   : > { %p39_p3 = por %p38_p10, %p37_p6  ;;  %p2127_p8 = por %p2334_p4, %p37_p6 }
  0x72   : > { %s225_s9 = sand.u32 1, %s1908_s20   ;;  %s1405_s7 = sshll.u32 %s1912_s21, 9 }
  0x73   : > { %s1313_s10 = sshll.u32 %s225_s9, 5  ;;  %s2137_s28 = scalar_lea.hbm %s2320_s0, %s1405_s7 }
  0x74   : > { %s229_s27 = scalar_lea.vmem [#allocation2], %s1313_s10  ;;  %p2141_p11 = pnand %p1563_p5, %p39_p3 }
  0x75   : > { %s236_s6 = sshll.u32 %s229_s27, 4  ;;  %s2145_s17 = scalar_lea.sflag [#allocation3], %s225_s9  ;;  %s2139_s6 = int_to_ptr.vmem [resolvable:$true] %s236_s6 }
  0x76   : > { %s1808_s29 = scalar_lea.hbm %s2137_s28, 512  ;;  %p1810_p9 = pneg %p2141_p11 }
  0x77   : > { %p1809_p7 = scmp.ne.s32.totalorder %s2137_s28, %s1808_s29  ;;  %s1813_s7 = scalar_lea.hbm %s2320_s0, 1024 }
  0x78   : > { %p1814_p2 = scmp.lt.u32.totalorder %s2137_s28, %s2320_s0  ;;  %p1815_p1 = scmp.lt.u32.totalorder %s1813_s7, %s1808_s29 }
  0x79   : > { %p1811_p12 = pnand %p1810_p9, %p1809_p7  ;;  %p1817_p6 = scmp.lt.u32.totalorder %s1808_s29, %s2137_s28 }
  0x7a   : > { %p1816_p13 = por %p1815_p1, %p1814_p2 }
  0x7b   : > { %p1812_p0 = pneg %p1811_p12 }
  0x7c   : > { %p1818_p10 = por %p1817_p6, %p1816_p13 }
  0x7e   : > { %p1819_p3 = pnand %p1818_p10, %p1812_p0 }
  0x80   : > { %1822 = shalt.err (!%p1819_p3)
}
  0x81   : > { %s1823_s9 = scalar_lea.vmem %s2139_s6, 512  ;;  %s1922_s27 = smov [#allocation2]  }
  0x82   : > { %p1824_p4 = scmp.ne.s32.totalorder %s2139_s6, %s1823_s9  ;;  %s1828_s23 = sshll.u32 %s1922_s27, 4  ;;  %s1829_s23 = int_to_ptr.vmem [resolvable:$false] %s1828_s23 }
  0x83   : > { %s1830_s10 = scalar_lea.vmem %s1829_s23, 1024  ;;  %p1831_p12 = scmp.lt.s32.totalorder %s2139_s6, %s1829_s23 }
  0x84   : > { %p1826_p5 = pnand %p1824_p4, %p1810_p9  ;;  %p1832_p2 = scmp.lt.s32.totalorder %s1830_s10, %s1823_s9 }
  0x86   : > { %p1827_p7 = pneg %p1826_p5  ;;  %p1833_p1 = por %p1832_p2, %p1831_p12 }
  0x88   : > { %p1834_p13 = pnand %p1833_p1, %p1827_p7 }
  0x8a   : > { %1837 = shalt.err (!%p1834_p13)
}
  0x8b   : > { %1554 = dma.hbm_to_vmem [thread:$0]  (!%p2141_p11), %s2137_s28, 512, %s2139_s6, %s2145_s17, %s1918_s14, %s1918_s14, %s1919_s15  }
  0x8c   : > { %p2337_p9 = scmp.ne.s32.totalorder %s2331_s26, 0 }
  0x8d   : > { %s2179_s29 = sand.u32 (!%p2337_p9), 1, %s1904_s19   ;;  %p2338_p0 = scmp.ne.s32.totalorder (!%p2337_p9), %s2329_s24, 0 }
  0x8e   : > { %248 = sbr.rel (%p2337_p9) target bundleno = 677 (0x2a5), region = 40  ;;  %s1317_s7 = sshll.u32 (!%p2337_p9), %s2179_s29, 5 }
  0x8f   : > { %s251_s11 = scalar_lea.sflag (!%p2337_p9), [#allocation3], %s2179_s29  ;;  %s2185_s16 = scalar_lea.vmem (!%p2337_p9), [#allocation2], %s1317_s7 }
  0x95   : > { %1883 = dma.done.wait (%p2338_p0), %s251_s11, 512  }
  0x96   : > { %1885 = vsyncadd (%p2338_p0), %s251_s11, 4294966784  ;;  %p2339_p11 = scmp.eq.s32.totalorder %s1978_s22, 0 }
  0x98   : > { %1887 = dma.done.wait (%p2339_p11), [#allocation6], 4160   ;;  %p2340_p6 = pmov %p2339_p11 }
  0x9a   : > { %1889 = vsyncadd (%p2340_p6), [#allocation6], 4294963136  ;;  %p2341_p10 = pmov %p2340_p6 }
  0x9b   : > { %p2342_p3 = pmov %p2340_p6 }
  0x9c   : > { %1891 = dma.done.wait (%p2341_p10), [#allocation9], 4112  }
  0x9d   : > { %1893 = vsyncadd (%p2342_p3), [#allocation9], 4294963184  ;;  %v1923_v0 = vmov 0   ;;  %v1612_v1 = vld [vmem:[#allocation5 + $0x4] ss:$16 sps:$4 sm:$0xff]   ;;  %v1668_v38 = vld [vmem:[#allocation8 + $0x48] sm:$0xff]  }
  0x9e   : > { %578 = vmatprep.mubr.bf16.mxu0 %v1923_v0  ;;  %651 = vmatprep.mubr.bf16.mxu1 %v1923_v0  ;;  %v1614_v2 = vld [vmem:[#allocation5 + $0xc] ss:$16 sps:$4 sm:$0xff]   ;;  %v1616_v3 = vld [vmem:[#allocation5] ss:$16 sps:$4 sm:$0xff]   ;;  %v1617_v4 = vld [vmem:[#allocation5 + $0x8] ss:$16 sps:$4 sm:$0xff]  }
  0x9f   : > { %546 = vmatprep.subr.bf16.mxu0 %v1612_v1  ;;  %619 = vmatprep.subr.bf16.mxu1 %v1614_v2  ;;  %v1618_v5 = vld [vmem:[#allocation5 + $0x24] ss:$16 sps:$4 sm:$0xff]   ;;  %v1620_v6 = vld [vmem:[#allocation5 + $0x2c] ss:$16 sps:$4 sm:$0xff]   ;;  %v1622_v7 = vld [vmem:[#allocation5 + $0x20] ss:$16 sps:$4 sm:$0xff]  }
  0xa0   : > { %547 = vmatpush1.bf16.msra.mxu0 %v1616_v3  ;;  %620 = vmatpush1.bf16.msra.mxu1 %v1617_v4  ;;  %v1623_v8 = vld [vmem:[#allocation5 + $0x28] ss:$16 sps:$4 sm:$0xff]   ;;  %v1624_v9 = vld [vmem:[#allocation5 + $0x44] ss:$16 sps:$4 sm:$0xff]   ;;  %v1626_v10 = vld [vmem:[#allocation5 + $0x4c] ss:$16 sps:$4 sm:$0xff]  }
  0xa1   : > { %548 = vmatprep.subr.bf16.mxu0 %v1618_v5  ;;  %621 = vmatprep.subr.bf16.mxu1 %v1620_v6  ;;  %v1628_v11 = vld [vmem:[#allocation5 + $0x40] ss:$16 sps:$4 sm:$0xff]   ;;  %v1629_v12 = vld [vmem:[#allocation5 + $0x48] ss:$16 sps:$4 sm:$0xff]   ;;  %v1630_v13 = vld [vmem:[#allocation5 + $0x64] ss:$16 sps:$4 sm:$0xff]   ;;  %v342_v5 = vlaneseq }
  0xa2   : > { %v1632_v14 = vld [vmem:[#allocation5 + $0x6c] ss:$16 sps:$4 sm:$0xff]   ;;  %v1634_v15 = vld [vmem:[#allocation5 + $0x60] ss:$16 sps:$4 sm:$0xff]   ;;  %v1635_v16 = vld [vmem:[#allocation5 + $0x68] ss:$16 sps:$4 sm:$0xff]  }
  0xa3   : > { %v1636_v17 = vld [vmem:[#allocation5 + $0x84] ss:$16 sps:$4 sm:$0xff]   ;;  %v1638_v18 = vld [vmem:[#allocation5 + $0x8c] ss:$16 sps:$4 sm:$0xff]   ;;  %v1640_v19 = vld [vmem:[#allocation5 + $0x80] ss:$16 sps:$4 sm:$0xff]  }
  0xa4   : > { %549 = vmatpush1.bf16.msra.mxu0 %v1622_v7  ;;  %622 = vmatpush1.bf16.msra.mxu1 %v1623_v8  ;;  %v1641_v20 = vld [vmem:[#allocation5 + $0x88] ss:$16 sps:$4 sm:$0xff]   ;;  %v1642_v21 = vld [vmem:[#allocation5 + $0xa4] ss:$16 sps:$4 sm:$0xff]   ;;  %v1644_v22 = vld [vmem:[#allocation5 + $0xac] ss:$16 sps:$4 sm:$0xff]  }
  0xa5   : > { %550 = vmatprep.subr.bf16.mxu0 %v1624_v9  ;;  %623 = vmatprep.subr.bf16.mxu1 %v1626_v10  ;;  %v1646_v23 = vld [vmem:[#allocation5 + $0xa0] ss:$16 sps:$4 sm:$0xff]   ;;  %v1647_v24 = vld [vmem:[#allocation5 + $0xa8] ss:$16 sps:$4 sm:$0xff]   ;;  %v1648_v25 = vld [vmem:[#allocation5 + $0xc4] ss:$16 sps:$4 sm:$0xff]  }
  0xa6   : > { %v1650_v26 = vld [vmem:[#allocation5 + $0xcc] ss:$16 sps:$4 sm:$0xff]   ;;  %v1652_v27 = vld [vmem:[#allocation5 + $0xc0] ss:$16 sps:$4 sm:$0xff]   ;;  %v1653_v28 = vld [vmem:[#allocation5 + $0xc8] ss:$16 sps:$4 sm:$0xff]  }
  0xa7   : > { %v1654_v29 = vld [vmem:[#allocation5 + $0xe4] ss:$16 sps:$4 sm:$0xff]   ;;  %v1656_v30 = vld [vmem:[#allocation5 + $0xec] ss:$16 sps:$4 sm:$0xff]   ;;  %v1658_v31 = vld [vmem:[#allocation5 + $0xe0] ss:$16 sps:$4 sm:$0xff]  }
  0xa8   : > { %551 = vmatpush1.bf16.msra.mxu0 %v1628_v11  ;;  %624 = vmatpush1.bf16.msra.mxu1 %v1629_v12  ;;  %v1659_v32 = vld [vmem:[#allocation5 + $0xe8] ss:$16 sps:$4 sm:$0xff]   ;;  %v1660_v35 = vld [vmem:[%s2185_s16] sm:$0xff]   ;;  %v1670_v39 = vld [vmem:[#allocation8 + $0xc8] sm:$0xff]   ;;  %v343_v6 = vshrl.u32 %v342_v5, 7  ;;  %s2258_s24 = scalar_lea.vmem [#allocation11], %s1317_s7 }
  0xa9   : > { %552 = vmatprep.subr.bf16.mxu0 %v1630_v13  ;;  %625 = vmatprep.subr.bf16.mxu1 %v1632_v14  ;;  %v1664_v33 = vld [vmem:[#allocation8 + $0x40] sm:$0xff]   ;;  %v1669_v40 = vld [vmem:[#allocation8 + $0x8] sm:$0xff]   ;;  %v1672_v43 = vld [vmem:[#allocation8 + $0x50] sm:$0xff]   ;;  %s1195_s26 = sshll.u32 %s2258_s24, 4  ;;  %s1414_s14 = sshll.u32 %s1978_s22, 9  ;;  %s2270_s26 = int_to_ptr.vmem [resolvable:$true] %s1195_s26 }
  0xaa   : > { %v1666_v34 = vld [vmem:[#allocation8 + $0xc0] sm:$0xff]   ;;  %v1671_v41 = vld [vmem:[#allocation8 + $0x88] sm:$0xff]   ;;  %v1674_v44 = vld [vmem:[#allocation8 + $0xd0] sm:$0xff]   ;;  %v344_v7 = vsub.s32 0, %v343_v6  ;;  %v352_v8 = vsub.s32 2, %v343_v6  ;;  %v348_v10 = vsub.s32 1, %v343_v6  ;;  %s2275_s6 = scalar_lea.hbm %s2325_s5, %s1414_s14 }
  0xab   : > { %v1665_v36 = vld [vmem:[#allocation8] sm:$0xff]   ;;  %v1673_v45 = vld [vmem:[#allocation8 + $0x10] sm:$0xff]   ;;  %v1676_v47 = vld [vmem:[#allocation8 + $0x58] sm:$0xff]   ;;  %v356_v11 = vsub.s32 3, %v343_v6  ;;  %s1182_s17 = scalar_lea.sflag [#allocation4], %s2179_s29  ;;  %s1838_s13 = scalar_lea.vmem %s2270_s26, 512 }
  0xac   : > { %553 = vmatpush1.bf16.msra.mxu0 %v1634_v15  ;;  %626 = vmatpush1.bf16.msra.mxu1 %v1635_v16  ;;  %v1667_v37 = vld [vmem:[#allocation8 + $0x80] sm:$0xff]   ;;  %v1675_v46 = vld [vmem:[#allocation8 + $0x90] sm:$0xff]   ;;  %v1678_v48 = vld [vmem:[#allocation8 + $0xd8] sm:$0xff]   ;;  %p1839_p4 = scmp.ne.s32.totalorder %s2270_s26, %s1838_s13  ;;  %s1924_s22 = smov [#allocation11]  }
  0xad   : > { %554 = vmatprep.subr.bf16.mxu0 %v1636_v17  ;;  %627 = vmatprep.subr.bf16.mxu1 %v1638_v18  ;;  %v1661_v42 = vld [vmem:[%s2185_s16 + $0x8] sm:$0xff]   ;;  %v1677_v49 = vld [vmem:[#allocation8 + $0x18] sm:$0xff]   ;;  %v1662_v51 = vld [vmem:[%s2185_s16 + $0x10] sm:$0xff]   ;;  %s1842_s9 = sshll.u32 %s1924_s22, 4  ;;  %s1843_s9 = int_to_ptr.vmem [resolvable:$false] %s1842_s9 }
  0xae   : > { %v1679_v50 = vld [vmem:[#allocation8 + $0x98] sm:$0xff]   ;;  %v1680_v52 = vld [vmem:[#allocation8 + $0x60] sm:$0xff]   ;;  %v1684_v56 = vld [vmem:[#allocation8 + $0x68] sm:$0xff]   ;;  %p1840_p5 = pnand %p1839_p4, %p2127_p8  ;;  %s1844_s27 = scalar_lea.vmem %s1843_s9, 1024 }
  0xaf   : > { %v1682_v53 = vld [vmem:[#allocation8 + $0xe0] sm:$0xff]   ;;  %v1686_v57 = vld [vmem:[#allocation8 + $0xe8] sm:$0xff]   ;;  %v1663_v59 = vld [vmem:[%s2185_s16 + $0x18] sm:$0xff]   ;;  %p1845_p12 = scmp.lt.s32.totalorder %s2270_s26, %s1843_s9  ;;  %p1846_p2 = scmp.lt.s32.totalorder %s1844_s27, %s1838_s13 }
  0xb0   : > { %555 = vmatpush1.bf16.msra.mxu0 %v1640_v19  ;;  %628 = vmatpush1.bf16.msra.mxu1 %v1641_v20  ;;  %v1681_v54 = vld [vmem:[#allocation8 + $0x20] sm:$0xff]   ;;  %v1685_v58 = vld [vmem:[#allocation8 + $0x28] sm:$0xff]   ;;  %v1688_v61 = vld [vmem:[#allocation8 + $0x70] sm:$0xff]   ;;  %p1841_p7 = pneg %p1840_p5 }
  0xb1   : > { %556 = vmatprep.subr.bf16.mxu0 %v1642_v21  ;;  %629 = vmatprep.subr.bf16.mxu1 %v1644_v22  ;;  %v1683_v55 = vld [vmem:[#allocation8 + $0xa0] sm:$0xff]   ;;  %v1687_v60 = vld [vmem:[#allocation8 + $0xa8] sm:$0xff]   ;;  %v1690_v62 = vld [vmem:[#allocation8 + $0xf0] sm:$0xff]   ;;  %p1847_p1 = por %p1846_p2, %p1845_p12 }
  0xb2   : > { %v1689_v63 = vld [vmem:[#allocation8 + $0x30] sm:$0xff]   ;;  %v1692_v2 = vld [vmem:[#allocation8 + $0x78] sm:$0xff]  }
  0xb3   : > { %v1691_v1 = vld [vmem:[#allocation8 + $0xb0] sm:$0xff]   ;;  %v1693_v3 = vld [vmem:[#allocation8 + $0x38] sm:$0xff]   ;;  %p1848_p13 = pnand %p1847_p1, %p1841_p7 }
  0xb4   : > { %557 = vmatpush1.bf16.msra.mxu0 %v1646_v23  ;;  %630 = vmatpush1.bf16.msra.mxu1 %v1647_v24  ;;  %v1695_v4 = vld [vmem:[#allocation8 + $0xb8] sm:$0xff]  }
  0xb5   : > { %558 = vmatprep.subr.bf16.mxu0 %v1648_v25  ;;  %631 = vmatprep.subr.bf16.mxu1 %v1650_v26  ;;  %v340_v9 = vld [vmem:[#allocation7] sm:$0xf] }
  0xb6   : > { %v2211_v12 = vrot.slane %v340_v9, %v344_v7  ;;  %v2213_v13 = vrot.slane %v340_v9, %v352_v8  ;;  %v2215_v14 = vrot.slane %v340_v9, %v348_v10  ;;  %v2217_v15 = vrot.slane %v340_v9, %v356_v11 }
  0xb8   : > { %559 = vmatpush1.bf16.msra.mxu0 %v1652_v27  ;;  %632 = vmatpush1.bf16.msra.mxu1 %v1653_v28 }
  0xb9   : > { %560 = vmatprep.subr.bf16.mxu0 %v1654_v29  ;;  %633 = vmatprep.subr.bf16.mxu1 %v1656_v30 }
  0xbc   : > { %561 = vmatpush1.bf16.msra.mxu0 %v1658_v31  ;;  %634 = vmatpush1.bf16.msra.mxu1 %v1659_v32 }
  0xbd   : > { %1438 = vmatprep.subr.bf16.mxu0 %v1664_v33  ;;  %1478 = vmatprep.subr.bf16.mxu1 %v1666_v34 }
  0xbf   : > { %579 = vmatmul.mubr.bf16.vlgmr.msra.gmra.mrb[0].mxu0 %v1660_v35  ;;  %652 = vmatmul.mubr.bf16.vlgmr.msra.gmra.mrb[0].mxu1 %v1660_v35 }
  0xc0   : > { %588 = vmatprep.mubr.bf16.mxu0 %v1923_v0  ;;  %661 = vmatprep.mubr.bf16.mxu1 %v1923_v0 }
  0xc1   : > { %1439 = vmatpush3.bf16.msra.mxu0 %v1665_v36  ;;  %1479 = vmatpush3.bf16.msra.mxu1 %v1667_v37 }
  0xc2   : > { %1440 = vmatprep.subr.bf16.mxu0 %v1668_v38  ;;  %1480 = vmatprep.subr.bf16.mxu1 %v1670_v39 }
  0xc5   : > { %1441 = vmatpush3.bf16.msra.mxu0 %v1669_v40  ;;  %1481 = vmatpush3.bf16.msra.mxu1 %v1671_v41 }
  0xc6   : > { %1442 = vmatprep.subr.bf16.mxu0 %v1672_v43  ;;  %1482 = vmatprep.subr.bf16.mxu1 %v1674_v44 }
  0xc7   : > { %589 = vmatmul.mubr.bf16.gmra.mrb[4].mxu0 %v1661_v42  ;;  %662 = vmatmul.mubr.bf16.gmra.mrb[4].mxu1 %v1661_v42 }
  0xc8   : > { %598 = vmatprep.mubr.bf16.mxu0 %v1923_v0  ;;  %671 = vmatprep.mubr.bf16.mxu1 %v1923_v0 }
  0xc9   : > { %1443 = vmatpush3.bf16.msra.mxu0 %v1673_v45  ;;  %1483 = vmatpush3.bf16.msra.mxu1 %v1675_v46 }
  0xca   : > { %1444 = vmatprep.subr.bf16.mxu0 %v1676_v47  ;;  %1484 = vmatprep.subr.bf16.mxu1 %v1678_v48 }
  0xcd   : > { %1445 = vmatpush3.bf16.msra.mxu0 %v1677_v49  ;;  %1485 = vmatpush3.bf16.msra.mxu1 %v1679_v50 }
  0xce   : > { %1446 = vmatprep.subr.bf16.mxu0 %v1680_v52  ;;  %1486 = vmatprep.subr.bf16.mxu1 %v1682_v53 }
  0xcf   : > { %599 = vmatmul.mubr.bf16.gmra.mrb[8].mxu0 %v1662_v51  ;;  %672 = vmatmul.mubr.bf16.gmra.mrb[8].mxu1 %v1662_v51 }
  0xd0   : > { %608 = vmatprep.mubr.bf16.mxu0 %v1923_v0  ;;  %681 = vmatprep.mubr.bf16.mxu1 %v1923_v0  ;;  %v1694_v0 = vld [vmem:[#allocation8 + $0xf8] sm:$0xff]  }
  0xd1   : > { %1447 = vmatpush3.bf16.msra.mxu0 %v1681_v54  ;;  %1487 = vmatpush3.bf16.msra.mxu1 %v1683_v55 }
  0xd2   : > { %1448 = vmatprep.subr.bf16.mxu0 %v1684_v56  ;;  %1488 = vmatprep.subr.bf16.mxu1 %v1686_v57 }
  0xd5   : > { %1449 = vmatpush3.bf16.msra.mxu0 %v1685_v58  ;;  %1489 = vmatpush3.bf16.msra.mxu1 %v1687_v60 }
  0xd6   : > { %1450 = vmatprep.subr.bf16.mxu0 %v1688_v61  ;;  %1490 = vmatprep.subr.bf16.mxu1 %v1690_v62 }
  0xd7   : > { %609 = vmatmul.mubr.bf16.gmra.mrb[12].mxu0 %v1663_v59  ;;  %682 = vmatmul.mubr.bf16.gmra.mrb[12].mxu1 %v1663_v59 }
  0xd9   : > { %1451 = vmatpush3.bf16.msra.mxu0 %v1689_v63  ;;  %1491 = vmatpush3.bf16.msra.mxu1 %v1691_v1 }
  0xda   : > { %1452 = vmatprep.subr.bf16.mxu0 %v1692_v2  ;;  %1492 = vmatprep.subr.bf16.mxu1 %v1694_v0 }
  0xdd   : > { %1453 = vmatpush3.bf16.msra.mxu0 %v1693_v3  ;;  %1493 = vmatpush3.bf16.msra.mxu1 %v1695_v4 }
 0x192   : > { %v580_v16 = vpop.f32.mrb[0].mxu0  ;;  %v653_v17 = vpop.f32.mrb[0].mxu1 }
 0x193   : > { %v581_v18 = vadd.f32 %v580_v16, %v2211_v12  ;;  %v654_v19 = vadd.f32 %v653_v17, %v2213_v13  ;;  %v582_v20 = vpop.f32.mrb[1].mxu0  ;;  %v655_v21 = vpop.f32.mrb[1].mxu1 }
 0x194   : > { %v583_v22 = vadd.f32 %v582_v20, %v2215_v14  ;;  %v656_v23 = vadd.f32 %v655_v21, %v2217_v15  ;;  %v584_v24 = vpop.f32.mrb[2].mxu0  ;;  %v657_v25 = vpop.f32.mrb[2].mxu1 }
 0x195   : > { %v694_v26 = vmax.f32 %v654_v19, 0.0  ;;  %v585_v27 = vadd.f32 %v584_v24, %v2211_v12  ;;  %v658_v28 = vadd.f32 %v657_v25, %v2213_v13  ;;  %v586_v29 = vpop.f32.mrb[3].mxu0  ;;  %v659_v30 = vpop.f32.mrb[3].mxu1  ;;  %v692_v34 = vmax.f32 %v581_v18, 0.0 }
 0x196   : > { %v695_v31 = vmax.f32 %v656_v23, 0.0  ;;  %v587_v32 = vadd.f32 %v586_v29, %v2215_v14  ;;  %v660_v33 = vadd.f32 %v659_v30, %v2217_v15  ;;  %v693_v37 = vmax.f32 %v583_v22, 0.0 }
 0x197   : > { %v696_v35 = vmax.f32 %v585_v27, 0.0  ;;  %v698_v36 = vmax.f32 %v658_v28, 0.0 }
 0x198   : > { %v697_v38 = vmax.f32 %v587_v32, 0.0  ;;  %v699_v39 = vmax.f32 %v660_v33, 0.0 }
 0x199   : > { %v724_v40 = vpack.c.bf16 %v696_v35, %v692_v34  ;;  %v726_v41 = vpack.c.bf16 %v698_v36, %v694_v26 }
 0x19a   : > { %v725_v42 = vpack.c.bf16 %v697_v38, %v693_v37  ;;  %v727_v43 = vpack.c.bf16 %v699_v39, %v695_v31  ;;  %v590_v44 = vpop.f32.mrb[4].mxu0  ;;  %v663_v45 = vpop.f32.mrb[4].mxu1 }
 0x19b   : > { %v591_v46 = vadd.f32 %v590_v44, %v2211_v12  ;;  %v664_v47 = vadd.f32 %v663_v45, %v2213_v13  ;;  %v592_v48 = vpop.f32.mrb[5].mxu0  ;;  %v665_v49 = vpop.f32.mrb[5].mxu1 }
 0x19c   : > { %v593_v50 = vadd.f32 %v592_v48, %v2215_v14  ;;  %v666_v51 = vadd.f32 %v665_v49, %v2217_v15  ;;  %v594_v52 = vpop.f32.mrb[6].mxu0  ;;  %v667_v53 = vpop.f32.mrb[6].mxu1  ;;  %1035 = vmatprep.mubr.bf16.mxu0 %v725_v42  ;;  %1100 = vmatprep.mubr.bf16.mxu1 %v727_v43 }
 0x19d   : > { %v702_v54 = vmax.f32 %v664_v47, 0.0  ;;  %v595_v55 = vadd.f32 %v594_v52, %v2211_v12  ;;  %v668_v56 = vadd.f32 %v667_v53, %v2213_v13  ;;  %v596_v57 = vpop.f32.mrb[7].mxu0  ;;  %v669_v58 = vpop.f32.mrb[7].mxu1  ;;  %1036 = vmatmul.mubr.bf16.vlgmr.msra.gmra.mrb[16].mxu0 %v724_v40  ;;  %1101 = vmatmul.mubr.bf16.vlgmr.msra.gmra.mrb[16].mxu1 %v726_v41  ;;  %v700_v62 = vmax.f32 %v591_v46, 0.0 }
 0x19e   : > { %v703_v59 = vmax.f32 %v666_v51, 0.0  ;;  %v597_v60 = vadd.f32 %v596_v57, %v2215_v14  ;;  %v670_v61 = vadd.f32 %v669_v58, %v2217_v15  ;;  %v701_v2 = vmax.f32 %v593_v50, 0.0 }
 0x19f   : > { %v704_v63 = vmax.f32 %v595_v55, 0.0  ;;  %v706_v1 = vmax.f32 %v668_v56, 0.0 }
 0x1a0   : > { %v705_v0 = vmax.f32 %v597_v60, 0.0  ;;  %v707_v3 = vmax.f32 %v670_v61, 0.0 }
 0x1a1   : > { %v728_v4 = vpack.c.bf16 %v704_v63, %v700_v62  ;;  %v730_v5 = vpack.c.bf16 %v706_v1, %v702_v54 }
 0x1a2   : > { %v729_v6 = vpack.c.bf16 %v705_v0, %v701_v2  ;;  %v731_v7 = vpack.c.bf16 %v707_v3, %v703_v59  ;;  %v600_v8 = vpop.f32.mrb[8].mxu0  ;;  %v673_v9 = vpop.f32.mrb[8].mxu1 }
 0x1a3   : > { %v601_v10 = vadd.f32 %v600_v8, %v2211_v12  ;;  %v674_v11 = vadd.f32 %v673_v9, %v2213_v13  ;;  %v602_v16 = vpop.f32.mrb[9].mxu0  ;;  %v675_v17 = vpop.f32.mrb[9].mxu1 }
 0x1a4   : > { %v603_v18 = vadd.f32 %v602_v16, %v2215_v14  ;;  %v676_v19 = vadd.f32 %v675_v17, %v2217_v15  ;;  %v604_v20 = vpop.f32.mrb[10].mxu0  ;;  %v677_v21 = vpop.f32.mrb[10].mxu1  ;;  %1043 = vmatprep.mubr.bf16.mxu0 %v729_v6  ;;  %1108 = vmatprep.mubr.bf16.mxu1 %v731_v7 }
 0x1a5   : > { %v710_v22 = vmax.f32 %v674_v11, 0.0  ;;  %v605_v23 = vadd.f32 %v604_v20, %v2211_v12  ;;  %v678_v24 = vadd.f32 %v677_v21, %v2213_v13  ;;  %v606_v25 = vpop.f32.mrb[11].mxu0  ;;  %v679_v26 = vpop.f32.mrb[11].mxu1  ;;  %1044 = vmatmul.mubr.bf16.gmra.mrb[20].mxu0 %v728_v4  ;;  %1109 = vmatmul.mubr.bf16.gmra.mrb[20].mxu1 %v730_v5  ;;  %v708_v30 = vmax.f32 %v601_v10, 0.0  ;;  %v2251_v4 = vld [vmem:[#allocation10] ss:$0 sm:$0xff] }
 0x1a6   : > { %v711_v27 = vmax.f32 %v676_v19, 0.0  ;;  %v607_v28 = vadd.f32 %v606_v25, %v2215_v14  ;;  %v680_v29 = vadd.f32 %v679_v26, %v2217_v15  ;;  %v709_v33 = vmax.f32 %v603_v18, 0.0 }
 0x1a7   : > { %v712_v31 = vmax.f32 %v605_v23, 0.0  ;;  %v714_v32 = vmax.f32 %v678_v24, 0.0 }
 0x1a8   : > { %v713_v34 = vmax.f32 %v607_v28, 0.0  ;;  %v715_v35 = vmax.f32 %v680_v29, 0.0 }
 0x1a9   : > { %v732_v36 = vpack.c.bf16 %v712_v31, %v708_v30  ;;  %v734_v37 = vpack.c.bf16 %v714_v32, %v710_v22 }
 0x1aa   : > { %v733_v38 = vpack.c.bf16 %v713_v34, %v709_v33  ;;  %v735_v39 = vpack.c.bf16 %v715_v35, %v711_v27  ;;  %v610_v40 = vpop.f32.mrb[12].mxu0  ;;  %v683_v41 = vpop.f32.mrb[12].mxu1 }
 0x1ab   : > { %v611_v42 = vadd.f32 %v610_v40, %v2211_v12  ;;  %v684_v43 = vadd.f32 %v683_v41, %v2213_v13  ;;  %v612_v44 = vpop.f32.mrb[13].mxu0  ;;  %v685_v45 = vpop.f32.mrb[13].mxu1 }
 0x1ac   : > { %v613_v46 = vadd.f32 %v612_v44, %v2215_v14  ;;  %v686_v47 = vadd.f32 %v685_v45, %v2217_v15  ;;  %v614_v48 = vpop.f32.mrb[14].mxu0  ;;  %v687_v49 = vpop.f32.mrb[14].mxu1  ;;  %1051 = vmatprep.mubr.bf16.mxu0 %v733_v38  ;;  %1116 = vmatprep.mubr.bf16.mxu1 %v735_v39 }
 0x1ad   : > { %v718_v50 = vmax.f32 %v684_v43, 0.0  ;;  %v615_v51 = vadd.f32 %v614_v48, %v2211_v12  ;;  %v688_v52 = vadd.f32 %v687_v49, %v2213_v13  ;;  %v616_v53 = vpop.f32.mrb[15].mxu0  ;;  %v689_v54 = vpop.f32.mrb[15].mxu1  ;;  %1052 = vmatmul.mubr.bf16.gmra.mrb[24].mxu0 %v732_v36  ;;  %1117 = vmatmul.mubr.bf16.gmra.mrb[24].mxu1 %v734_v37  ;;  %v716_v58 = vmax.f32 %v611_v42, 0.0 }
 0x1ae   : > { %v719_v55 = vmax.f32 %v686_v47, 0.0  ;;  %v617_v56 = vadd.f32 %v616_v53, %v2215_v14  ;;  %v690_v57 = vadd.f32 %v689_v54, %v2217_v15  ;;  %v717_v61 = vmax.f32 %v613_v46, 0.0 }
 0x1af   : > { %v720_v59 = vmax.f32 %v615_v51, 0.0  ;;  %v722_v60 = vmax.f32 %v688_v52, 0.0 }
 0x1b0   : > { %v721_v62 = vmax.f32 %v617_v56, 0.0  ;;  %v723_v63 = vmax.f32 %v690_v57, 0.0 }
 0x1b1   : > { %v736_v1 = vpack.c.bf16 %v720_v59, %v716_v58  ;;  %v738_v2 = vpack.c.bf16 %v722_v60, %v718_v50 }
 0x1b2   : > { %v737_v12 = vpack.c.bf16 %v721_v62, %v717_v61  ;;  %v739_v0 = vpack.c.bf16 %v723_v63, %v719_v55 }
 0x1b4   : > { %1059 = vmatprep.mubr.bf16.mxu0 %v737_v12  ;;  %1124 = vmatprep.mubr.bf16.mxu1 %v739_v0 }
 0x1b5   : > { %1060 = vmatmul.mubr.bf16.gmra.mrb[28].mxu0 %v736_v1  ;;  %1125 = vmatmul.mubr.bf16.gmra.mrb[28].mxu1 %v738_v2 }
 0x270   : > { %v1454_v13 = vpop.f32.mrb[16].mxu0  ;;  %v1494_v3 = vpop.f32.mrb[16].mxu1 }
 0x271   : > { %v1455_v14 = vpop.f32.mrb[17].mxu0  ;;  %v1495_v15 = vpop.f32.mrb[17].mxu1 }
 0x272   : > { %v1456_v5 = vadd.f32 %v1455_v14, %v1454_v13  ;;  %v1496_v6 = vadd.f32 %v1495_v15, %v1494_v3  ;;  %v1457_v7 = vpop.f32.mrb[18].mxu0  ;;  %v1497_v8 = vpop.f32.mrb[18].mxu1 }
 0x273   : > { %v1458_v9 = vpop.f32.mrb[19].mxu0  ;;  %v1498_v10 = vpop.f32.mrb[19].mxu1 }
 0x274   : > { %v1038_v11 = vadd.f32 %v1456_v5, %v2251_v4  ;;  %v1459_v16 = vadd.f32 %v1458_v9, %v1457_v7  ;;  %v1499_v17 = vadd.f32 %v1498_v10, %v1497_v8 }
 0x276   : > { %v1103_v18 = vadd.f32 %v1496_v6, %v1038_v11  ;;  %v1041_v19 = vadd.f32 %v1459_v16, %v2251_v4 }
 0x278   : > { %v1106_v20 = vadd.f32 %v1499_v17, %v1041_v19  ;;  %v1460_v21 = vpop.f32.mrb[20].mxu0  ;;  %v1500_v22 = vpop.f32.mrb[20].mxu1  ;;  %v1133_v25 = vmax.f32 %v1103_v18, 0.0 }
 0x279   : > { %v1461_v23 = vpop.f32.mrb[21].mxu0  ;;  %v1501_v24 = vpop.f32.mrb[21].mxu1 }
 0x27a   : > { %v1134_v26 = vmax.f32 %v1106_v20, 0.0  ;;  %v1462_v27 = vadd.f32 %v1461_v23, %v1460_v21  ;;  %v1502_v28 = vadd.f32 %v1501_v24, %v1500_v22  ;;  %v1463_v29 = vpop.f32.mrb[22].mxu0  ;;  %v1503_v30 = vpop.f32.mrb[22].mxu1 }
 0x27b   : > { %v1464_v31 = vpop.f32.mrb[23].mxu0  ;;  %v1504_v32 = vpop.f32.mrb[23].mxu1 }
 0x27c   : > { %v1418_v33 = vpack.c.bf16 %v1134_v26, %v1133_v25  ;;  %v1046_v34 = vadd.f32 %v1462_v27, %v2251_v4  ;;  %v1465_v35 = vadd.f32 %v1464_v31, %v1463_v29  ;;  %v1505_v36 = vadd.f32 %v1504_v32, %v1503_v30 }
 0x27e   : > { %1419 = vst [vmem:[%s2258_s24] sm:$0xff] %v1418_v33   ;;  %v1111_v37 = vadd.f32 %v1502_v28, %v1046_v34  ;;  %v1049_v38 = vadd.f32 %v1465_v35, %v2251_v4 }
 0x280   : > { %v1114_v39 = vadd.f32 %v1505_v36, %v1049_v38  ;;  %v1466_v40 = vpop.f32.mrb[24].mxu0  ;;  %v1506_v41 = vpop.f32.mrb[24].mxu1  ;;  %v1135_v44 = vmax.f32 %v1111_v37, 0.0 }
 0x281   : > { %v1467_v42 = vpop.f32.mrb[25].mxu0  ;;  %v1507_v43 = vpop.f32.mrb[25].mxu1 }
 0x282   : > { %v1136_v45 = vmax.f32 %v1114_v39, 0.0  ;;  %v1468_v46 = vadd.f32 %v1467_v42, %v1466_v40  ;;  %v1508_v47 = vadd.f32 %v1507_v43, %v1506_v41  ;;  %v1469_v48 = vpop.f32.mrb[26].mxu0  ;;  %v1509_v49 = vpop.f32.mrb[26].mxu1 }
 0x283   : > { %v1470_v50 = vpop.f32.mrb[27].mxu0  ;;  %v1510_v51 = vpop.f32.mrb[27].mxu1 }
 0x284   : > { %v1423_v52 = vpack.c.bf16 %v1136_v45, %v1135_v44  ;;  %v1054_v53 = vadd.f32 %v1468_v46, %v2251_v4  ;;  %v1471_v54 = vadd.f32 %v1470_v50, %v1469_v48  ;;  %v1511_v55 = vadd.f32 %v1510_v51, %v1509_v49 }
 0x286   : > { %1435 = vst [vmem:[%s2258_s24 + $0x8] sm:$0xff] %v1423_v52   ;;  %v1119_v56 = vadd.f32 %v1508_v47, %v1054_v53  ;;  %v1057_v57 = vadd.f32 %v1471_v54, %v2251_v4 }
 0x288   : > { %v1122_v58 = vadd.f32 %v1511_v55, %v1057_v57  ;;  %v1472_v59 = vpop.f32.mrb[28].mxu0  ;;  %v1512_v60 = vpop.f32.mrb[28].mxu1  ;;  %v1137_v63 = vmax.f32 %v1119_v56, 0.0 }
 0x289   : > { %v1473_v61 = vpop.f32.mrb[29].mxu0  ;;  %v1513_v62 = vpop.f32.mrb[29].mxu1 }
 0x28a   : > { %v1138_v1 = vmax.f32 %v1122_v58, 0.0  ;;  %v1474_v2 = vadd.f32 %v1473_v61, %v1472_v59  ;;  %v1514_v12 = vadd.f32 %v1513_v62, %v1512_v60  ;;  %v1475_v0 = vpop.f32.mrb[30].mxu0  ;;  %v1515_v13 = vpop.f32.mrb[30].mxu1 }
 0x28b   : > { %v1476_v3 = vpop.f32.mrb[31].mxu0  ;;  %v1516_v14 = vpop.f32.mrb[31].mxu1 }
 0x28c   : > { %v1428_v15 = vpack.c.bf16 %v1138_v1, %v1137_v63  ;;  %v1062_v5 = vadd.f32 %v1474_v2, %v2251_v4  ;;  %v1477_v6 = vadd.f32 %v1476_v3, %v1475_v0  ;;  %v1517_v7 = vadd.f32 %v1516_v14, %v1515_v13 }
 0x28e   : > { %1436 = vst [vmem:[%s2258_s24 + $0x10] sm:$0xff] %v1428_v15   ;;  %v1127_v8 = vadd.f32 %v1514_v12, %v1062_v5  ;;  %v1065_v9 = vadd.f32 %v1477_v6, %v2251_v4 }
 0x290   : > { %v1130_v10 = vadd.f32 %v1517_v7, %v1065_v9  ;;  %v1139_v11 = vmax.f32 %v1127_v8, 0.0 }
 0x292   : > { %v1140_v16 = vmax.f32 %v1130_v10, 0.0 }
 0x294   : > { %v1433_v17 = vpack.c.bf16 %v1140_v16, %v1139_v11 }
 0x296   : > { %1437 = vst [vmem:[%s2258_s24 + $0x18] sm:$0xff] %v1433_v17  }
 0x297   : > { %1851 = shalt.err (!%p1848_p13)
}
 0x298   : > { %s1852_s23 = scalar_lea.hbm %s2275_s6, 512  ;;  %s1856_s11 = scalar_lea.hbm %s2325_s5, 1024 }
 0x299   : > { %p1853_p9 = scmp.ne.s32.totalorder %s2275_s6, %s1852_s23  ;;  %p1857_p6 = scmp.lt.u32.totalorder %s2275_s6, %s2325_s5 }
 0x29a   : > { %p1858_p10 = scmp.lt.u32.totalorder %s1856_s11, %s1852_s23  ;;  %p1860_p4 = scmp.lt.u32.totalorder %s1852_s23, %s2275_s6 }
 0x29b   : > { %p1854_p0 = pnand %p1853_p9, %p2127_p8 }
 0x29c   : > { %p1859_p3 = por %p1858_p10, %p1857_p6 }
 0x29d   : > { %p1855_p11 = pneg %p1854_p0 }
 0x29e   : > { %p1861_p5 = por %p1860_p4, %p1859_p3 }
 0x2a0   : > { %p1862_p7 = pnand %p1861_p5, %p1855_p11 }
 0x2a2   : > { %1865 = shalt.err (!%p1862_p7)
}
 0x2a3   : > { %s1925_s14 = smov 64   ;;  %s1926_s15 = smov 4  }
 0x2a4   : > { %1536 = dma.vmem_to_hbm [thread:$0]  (%p2127_p8), %s2270_s26, 512, %s2275_s6, %s1182_s17, %s1925_s14, %s1925_s14, %s1926_s15  }
 0x2a5 PF: > { %s1210_s28 = sand.u32 1, %s1900_s18   ;;  %p2343_p12 = scmp.ne.s32.totalorder %s2330_s25, 0 }
 0x2a6   : > { %p2344_p2 = scmp.ge.s32.totalorder %s1912_s21, 2  ;;  %s1211_s13 = scalar_lea.sflag [#allocation4], %s1210_s28 }
 0x2a8   : > { %p1556_p1 = pnand %p2344_p2, %p2343_p12 }
 0x2aa   : > { %1895 = dma.done.wait (!%p1556_p1), %s1211_s13, 512  }
 0x2ab   : > { %1897 = vsyncadd (!%p1556_p1), %s1211_s13, 4294966784  ;;  %p20_p13 = scmp.ge.s32.totalorder %s2114_s12, 4   ;;  %s2345_s18 = smov %s1904_s19 }
 0x2ac   : > { %s2346_s19 = smov %s1908_s20  ;;  %s2347_s20 = smov %s2123_s30 }
 0x2ad   : > { %s2348_s21 = smov %s2114_s12  ;;  %22 = sbr.rel (!%p20_p13) target bundleno = 7 (0x7), region = 101 }
 0x2b4   :  { %1216 = vsyncpa [#allocation3], 1 }
 0x2b5   :  { %1218 = vsyncpa [#allocation3 + $0x1], 1 }
 0x2b6   :  { %1219 = vsyncpa [#allocation6], 1 }
 0x2b7   :  { %1220 = vsyncpa [#allocation9], 1 }
 0x2b8   :  { %1221 = vsyncpa [#allocation4], 1 }
 0x2b9   :  { %1223 = vsyncpa [#allocation4 + $0x1], 1 }

</bundles_post_ra>
